<compile_context>
chip_gen: v6e
topology: v6e:2x2x1
jax: 0.10.0
libtpu: 0.0.40
codegen_flags: <defaults>
</compile_context>

<pallas_src>
import jax
import jax.numpy as jnp
from jax import lax
from jax.experimental import pallas as pl
from jax.experimental.pallas import tpu as pltpu

LANE = 128


def _round_up(n, m):
    return ((n + m - 1) // m) * m


# ----------------------------- Pallas kernel ------------------------------- #

def _make_kernel(stride, B, L, L2, hid_p, out_p, compute_dtype):
    L_pad = L + 2  # one zero row of spatial padding on each side of y1

    def tap_slice(t):
        # rows {j*stride + t : j in [0, L2)} of the padded activation
        if stride == 1:
            return pl.ds(t, L2)
        return pl.ds(t, L2, stride=stride)

    def kernel(x_ref, w1_ref, b1_ref, w2_ref, b2_ref, w3_ref, b3_ref,
               wr_ref, br_ref, o_ref, y1p_ref):
        in_d = x_ref.shape[-1]
        x = x_ref[...]                                    # (B, L, in_d) f32
        x2d = x.reshape(B * L, in_d)

        # ---- layer_1: 1x1 conv (BN scale folded into weights) + bias + ReLU ----
        y1 = jnp.dot(x2d.astype(compute_dtype), w1_ref[...],
                     preferred_element_type=jnp.float32)
        y1 = jnp.maximum(y1 + b1_ref[...], 0.0)           # (B*L, hid_p) f32

        # ---- stage y1 into a zero-padded f32 VMEM scratch ----
        # The pad rows are rewritten every step on purpose: hoisting them under
        # pl.when(program_id == 0) is unsafe when the "parallel" batch axis is
        # split across TensorCores (the 2nd core never sees program_id == 0).
        y1p_ref[:, 0:1, :] = jnp.zeros((B, 1, hid_p), jnp.float32)
        y1p_ref[:, L + 1:L_pad, :] = jnp.zeros((B, 1, hid_p), jnp.float32)
        y1p_ref[:, 1:L + 1, :] = y1.reshape(B, L, hid_p)

        # ---- layer_2: k=3 / stride / pad=1 conv via shifted strided views ----
        # The stride is applied BEFORE the tap matmuls (strided sublane reads),
        # so layer_2 costs O(L2 * hid^2) MXU FLOPs and O(L) VMEM.
        def tap(t):
            return y1p_ref[:, tap_slice(t), :].reshape(B * L2, hid_p)

        y2 = (jnp.dot(tap(0).astype(compute_dtype), w2_ref[0],
                      preferred_element_type=jnp.float32)
              + jnp.dot(tap(1).astype(compute_dtype), w2_ref[1],
                        preferred_element_type=jnp.float32)
              + jnp.dot(tap(2).astype(compute_dtype), w2_ref[2],
                        preferred_element_type=jnp.float32))
        y2 = jnp.maximum(y2 + b2_ref[...], 0.0)           # (B*L2, hid_p) f32

        # ---- layer_3: 1x1 conv + folded BN (no ReLU) ----
        y3 = jnp.dot(y2.astype(compute_dtype), w3_ref[...],
                     preferred_element_type=jnp.float32)
        y3 = y3 + b3_ref[...]                             # (B*L2, out_p) f32

        # ---- residual: one f32 1x1 projection (downsample conv OR padded I) ----
        # Kept in f32 regardless of compute_dtype so the residual is exact.
        if stride == 1:
            xr = x2d
        else:
            xr = x_ref[:, pl.ds(0, L2, stride=stride), :].reshape(B * L2, in_d)
        res = jnp.dot(xr, wr_ref[...], preferred_element_type=jnp.float32)
        res = res + br_ref[...]

        out = jnp.maximum(y3 + res, 0.0)
        # out_p is a multiple of 128 -> lane-dense, unmasked HBM store.
        o_ref[...] = out.reshape(B, L2, out_p).astype(o_ref.dtype)

    return kernel


# ------------------------------- wrappers ----------------------------------- #

def residual_block_1d(x_nlc, kparams, *, stride, downsample, b_tile=1,
                      compute_dtype=jnp.float32, vmem_limit_bytes=None):
    """Channels-last residual block: (N, L, C_in) f32 -> (N, L2, C_out) f32.

    Keep the surrounding model channels-last (NLC) end-to-end so this entry
    point involves no HBM transposes or dtype casts around the kernel.
    """
    N, L, in_d = x_nlc.shape
    assert N % b_tile == 0, (N, b_tile)
    out_d = kparams["out_d"]
    if not downsample:
        assert stride == 1 and in_d == out_d, (
            "identity residual requires stride == 1 and in_d == out_d")
    L2 = (L - 1) // stride + 1
    hid_p = kparams["w2"].shape[-1]
    out_p = kparams["w3"].shape[-1]

    args = [x_nlc,
            kparams["w1"], kparams["b1"],
            kparams["w2"], kparams["b2"],
            kparams["w3"], kparams["b3"],
            kparams["wr"], kparams["br"]]

    def rep_spec(a):
        return pl.BlockSpec(a.shape, lambda b, _n=a.ndim: (0,) * _n)

    in_specs = [pl.BlockSpec((b_tile, L, in_d), lambda b: (b, 0, 0))]
    in_specs += [rep_spec(a) for a in args[1:]]

    out = pl.pallas_call(
        _make_kernel(stride, b_tile, L, L2, hid_p, out_p, compute_dtype),
        out_shape=jax.ShapeDtypeStruct((N, L2, out_p), jnp.float32),
        grid_spec=pltpu.PrefetchScalarGridSpec(
            num_scalar_prefetch=0,
            grid=(N // b_tile,),
            in_specs=in_specs,
            out_specs=pl.BlockSpec((b_tile, L2, out_p), lambda b: (b, 0, 0)),
            scratch_shapes=[pltpu.VMEM((b_tile, L + 2, hid_p), jnp.float32)],
        ),
        compiler_params=pltpu.CompilerParams(
            dimension_semantics=("parallel",),
            vmem_limit_bytes=vmem_limit_bytes),
    )(*args)

    if out_p != out_d:
        # Strip lane padding; a no-op when out_d is already a multiple of 128
        # (typical production bottleneck widths).
        out = out[..., :out_d]
    return out


def residual_block_1d_ncl(x_ncl, kparams, **kw):
    """PyTorch-parity adapter: (N, C_in, L) -> (N, C_out, L2).

    The two transposes here are HBM round trips and exist only so the test can
    compare against the NCL PyTorch semantics; production code should stay NLC
    and call residual_block_1d directly.
    """
    y = residual_block_1d(jnp.transpose(x_ncl, (0, 2, 1)), kparams, **kw)
    return jnp.transpose(y, (0, 2, 1))


# ------------------------- parameter construction -------------------------- #

def init_params(key, in_d, hid_d, out_d, downsample):
    """Deterministic synthetic parameters in PyTorch layout."""
    ks = iter(jax.random.split(key, 32))

    def conv_w(out_c, in_c, ksize):
        fan = in_c * ksize
        return jax.random.normal(next(ks), (out_c, in_c, ksize), jnp.float32) / jnp.sqrt(fan)

    def bn(c):
        return dict(
            g=1.0 + 0.1 * jax.random.normal(next(ks), (c,), jnp.float32),
            b=0.1 * jax.random.normal(next(ks), (c,), jnp.float32),
            m=0.1 * jax.random.normal(next(ks), (c,), jnp.float32),
            v=0.5 + jnp.abs(jax.random.normal(next(ks), (c,), jnp.float32)) * 0.5,
        )

    p = {
        "c1_w": conv_w(hid_d, in_d, 1),
        "c1_b": 0.1 * jax.random.normal(next(ks), (hid_d,), jnp.float32),
        "bn1": bn(hid_d),
        "c2_w": conv_w(hid_d, hid_d, 3),
        "c2_b": 0.1 * jax.random.normal(next(ks), (hid_d,), jnp.float32),
        "bn2": bn(hid_d),
        "c3_w": conv_w(out_d, hid_d, 1),
        "c3_b": 0.1 * jax.random.normal(next(ks), (out_d,), jnp.float32),
        "bn3": bn(out_d),
    }
    if downsample:
        p["cd_w"] = conv_w(out_d, in_d, 1)
        p["cd_b"] = 0.1 * jax.random.normal(next(ks), (out_d,), jnp.float32)
        p["bnd"] = bn(out_d)
    return p


def fold_for_kernel(p, downsample, eps=1e-5, compute_dtype=jnp.float32, lane=LANE):
    """Fold eval-mode BN (scale into weights, shift into bias), reshape to
    channels-last matmul layout, and zero-pad hidden/output channel dims to
    lane multiples so every in-kernel load/store is lane-dense (exact: padded
    channels evaluate to relu(0) = 0 and are sliced off by the wrapper)."""
    def scale_bias(conv_b, bn):
        s = bn["g"] / jnp.sqrt(bn["v"] + eps)              # (out_c,)
        return s, bn["b"] + (conv_b - bn["m"]) * s

    in_d = p["c1_w"].shape[1]
    hid_d = p["c2_w"].shape[0]
    out_d = p["c3_w"].shape[0]
    hid_p = _round_up(hid_d, lane)
    out_p = _round_up(out_d, lane)

    kp = {"in_d": int(in_d), "hid_d": int(hid_d), "out_d": int(out_d),
          "hid_p": int(hid_p), "out_p": int(out_p)}

    s1, b1 = scale_bias(p["c1_b"], p["bn1"])
    w1 = jnp.transpose(p["c1_w"][:, :, 0]) * s1[None, :]            # (in_d, hid)
    kp["w1"] = jnp.pad(w1, ((0, 0), (0, hid_p - hid_d))).astype(compute_dtype)
    kp["b1"] = jnp.pad(b1, (0, hid_p - hid_d))[None, :].astype(jnp.float32)

    s2, b2 = scale_bias(p["c2_b"], p["bn2"])
    w2 = jnp.stack([jnp.transpose(p["c2_w"][:, :, k]) * s2[None, :]
                    for k in range(3)])                              # (3, hid, hid)
    kp["w2"] = jnp.pad(w2, ((0, 0), (0, hid_p - hid_d),
                            (0, hid_p - hid_d))).astype(compute_dtype)
    kp["b2"] = jnp.pad(b2, (0, hid_p - hid_d))[None, :].astype(jnp.float32)

    s3, b3 = scale_bias(p["c3_b"], p["bn3"])
    w3 = jnp.transpose(p["c3_w"][:, :, 0]) * s3[None, :]             # (hid, out)
    kp["w3"] = jnp.pad(w3, ((0, hid_p - hid_d),
                            (0, out_p - out_d))).astype(compute_dtype)
    kp["b3"] = jnp.pad(b3, (0, out_p - out_d))[None, :].astype(jnp.float32)

    # Residual projection: folded downsample conv, or an exact padded identity.
    # Kept f32 regardless of compute_dtype so the residual add matches f32.
    if downsample:
        sd, bd = scale_bias(p["cd_b"], p["bnd"])
        wr = jnp.transpose(p["cd_w"][:, :, 0]) * sd[None, :]         # (in_d, out)
        br = bd
    else:
        assert in_d == out_d, "identity residual requires in_d == out_d"
        wr = jnp.eye(in_d, dtype=jnp.float32)
        br = jnp.zeros((out_d,), jnp.float32)
    kp["wr"] = jnp.pad(wr, ((0, 0), (0, out_p - out_d))).astype(jnp.float32)
    kp["br"] = jnp.pad(br, (0, out_p - out_d))[None, :].astype(jnp.float32)
    return kp


# ------------------------------ JAX reference ------------------------------ #

def reference(x_ncl, p, stride, downsample, eps=1e-5):
    def conv1d(x, w, b, s, pad):
        y = lax.conv_general_dilated(x, w, (s,), [(pad, pad)],
                                     dimension_numbers=("NCH", "OIH", "NCH"))
        return y + b[None, :, None]

    def bn(x, d):
        scale = d["g"] / jnp.sqrt(d["v"] + eps)
        return (x - d["m"][None, :, None]) * scale[None, :, None] + d["b"][None, :, None]

    res = x_ncl
    h = jax.nn.relu(bn(conv1d(x_ncl, p["c1_w"], p["c1_b"], 1, 0), p["bn1"]))
    h = jax.nn.relu(bn(conv1d(h, p["c2_w"], p["c2_b"], stride, 1), p["bn2"]))
    h = bn(conv1d(h, p["c3_w"], p["c3_b"], 1, 0), p["bn3"])
    if downsample:
        res = bn(conv1d(x_ncl, p["cd_w"], p["cd_b"], stride, 0), p["bnd"])
    return jax.nn.relu(h + res)


# ---------------------------------- main ----------------------------------- #

def _run_case(key, N, in_d, hid_d, out_d, L, stride, downsample, b_tile,
              compute_dtype=jnp.float32, atol=5e-4, rtol=5e-4):
    kx, kp = jax.random.split(key)
    x_ncl = jax.random.normal(kx, (N, in_d, L), jnp.float32)
    params = init_params(kp, in_d, hid_d, out_d, downsample)
    kparams = fold_for_kernel(params, downsample, compute_dtype=compute_dtype)

    got = residual_block_1d_ncl(x_ncl, kparams, stride=stride,
                                downsample=downsample, b_tile=b_tile,
                                compute_dtype=compute_dtype)
    got = jax.block_until_ready(got)
    want = reference(x_ncl, params, stride, downsample)
    assert got.shape == want.shape, (got.shape, want.shape)
    assert bool(jnp.allclose(got, want, atol=atol, rtol=rtol)), (
        f"mismatch ({compute_dtype}): max abs err = "
        f"{float(jnp.max(jnp.abs(got - want)))}")
    return got


if __name__ == "__main__":
    key = jax.random.PRNGKey(0)
    k1, k2, k3 = jax.random.split(key, 3)

    # Case 1: bottleneck with stride-2 downsample; b_tile=1 -> grid=(2,) so both
    # TensorCores get work on a 2-TC part; f32 compute.
    _run_case(k1, N=2, in_d=4, hid_d=8, out_d=16, L=16, stride=2,
              downsample=True, b_tile=1)

    # Case 2: identity residual (in_d == out_d, stride=1, no downsample);
    # residual realized as an exact f32 padded-identity projection.
    _run_case(k2, N=2, in_d=8, hid_d=4, out_d=8, L=16, stride=1,
              downsample=False, b_tile=1)

    # Case 3: bf16 MXU-operand path (f32 scratch / element-wise / residual),
    # looser tolerance for the quantized matmul LHS/weights.
    _run_case(k3, N=2, in_d=4, hid_d=8, out_d=16, L=16, stride=2,
              downsample=True, b_tile=1, compute_dtype=jnp.bfloat16,
              atol=1e-1, rtol=1e-1)

    print("KERNEL_OK")
</pallas_src>

<mosaic_0001>
module attributes {stable_mosaic.version = 11 : i64} {
  func.func @kernel(%arg0: i32, %arg1: memref<1x16x4xf32, #tpu.memory_space<vmem>>, %arg2: memref<4x128xf32, #tpu.memory_space<vmem>>, %arg3: memref<1x128xf32, #tpu.memory_space<vmem>>, %arg4: memref<3x128x128xf32, #tpu.memory_space<vmem>>, %arg5: memref<1x128xf32, #tpu.memory_space<vmem>>, %arg6: memref<128x128xf32, #tpu.memory_space<vmem>>, %arg7: memref<1x128xf32, #tpu.memory_space<vmem>>, %arg8: memref<4x128xf32, #tpu.memory_space<vmem>>, %arg9: memref<1x128xf32, #tpu.memory_space<vmem>>, %arg10: memref<1x8x128xf32, #tpu.memory_space<vmem>>, %arg11: memref<1x18x128xf32, #tpu.memory_space<vmem>>) attributes {dimension_semantics = [#tpu.dimension_semantics<parallel>], iteration_bounds = array<i64: 2>, scalar_prefetch = 0 : i64, scratch_operands = 1 : i64, tpu.core_type = #tpu.core_type<tc>, window_params = [{transform_indices = @transform_0, window_bounds = array<i64: 1, 16, 4>}, {pipeline_mode = #tpu.pipeline_mode<synchronous>, transform_indices = @transform_1, window_bounds = array<i64: 4, 128>}, {pipeline_mode = #tpu.pipeline_mode<synchronous>, transform_indices = @transform_2, window_bounds = array<i64: 1, 128>}, {pipeline_mode = #tpu.pipeline_mode<synchronous>, transform_indices = @transform_3, window_bounds = array<i64: 3, 128, 128>}, {pipeline_mode = #tpu.pipeline_mode<synchronous>, transform_indices = @transform_4, window_bounds = array<i64: 1, 128>}, {pipeline_mode = #tpu.pipeline_mode<synchronous>, transform_indices = @transform_5, window_bounds = array<i64: 128, 128>}, {pipeline_mode = #tpu.pipeline_mode<synchronous>, transform_indices = @transform_6, window_bounds = array<i64: 1, 128>}, {pipeline_mode = #tpu.pipeline_mode<synchronous>, transform_indices = @transform_7, window_bounds = array<i64: 4, 128>}, {pipeline_mode = #tpu.pipeline_mode<synchronous>, transform_indices = @transform_8, window_bounds = array<i64: 1, 128>}, {transform_indices = @transform_9, window_bounds = array<i64: 1, 8, 128>}]} {
    %c0 = arith.constant 0 : index
    %c0_0 = arith.constant 0 : index
    %c0_1 = arith.constant 0 : index
    %0 = vector.load %arg1[%c0, %c0_0, %c0_1] : memref<1x16x4xf32, #tpu.memory_space<vmem>>, vector<1x16x4xf32>
    %1 = vector.shape_cast %0 : vector<1x16x4xf32> to vector<16x4xf32>
    %c0_2 = arith.constant 0 : index
    %c0_3 = arith.constant 0 : index
    %2 = vector.load %arg2[%c0_2, %c0_3] : memref<4x128xf32, #tpu.memory_space<vmem>>, vector<4x128xf32>
    %cst = arith.constant dense<0.000000e+00> : vector<16x128xf32>
    %3 = tpu.matmul %1, %2, %cst {dimension_numbers = #tpu.dot_dimension_numbers<[1], [0], [0], [1], [0, 0, 1, 1], [], []>} : vector<16x4xf32>, vector<4x128xf32>, vector<16x128xf32> -> vector<16x128xf32>
    %c0_4 = arith.constant 0 : index
    %c0_5 = arith.constant 0 : index
    %4 = vector.load %arg3[%c0_4, %c0_5] : memref<1x128xf32, #tpu.memory_space<vmem>>, vector<1x128xf32>
    %5 = vector.broadcast %4 : vector<1x128xf32> to vector<16x128xf32>
    %6 = arith.addf %3, %5 : vector<16x128xf32>
    %cst_6 = arith.constant 0.000000e+00 : f32
    %7 = vector.broadcast %cst_6 : f32 to vector<16x128xf32>
    %8 = arith.maximumf %6, %7 : vector<16x128xf32>
    %cst_7 = arith.constant 0.000000e+00 : f32
    %9 = vector.broadcast %cst_7 : f32 to vector<1x1x128xf32>
    %c0_8 = arith.constant 0 : index
    %c0_9 = arith.constant 0 : index
    %c0_10 = arith.constant 0 : index
    %10 = vector.load %arg11[%c0_8, %c0_9, %c0_10] : memref<1x18x128xf32, #tpu.memory_space<vmem>>, vector<1x1x128xf32>
    tpu.vector_store %arg11[%c0_8, %c0_9, %c0_10], %9 {strides = array<i32>} : memref<1x18x128xf32, #tpu.memory_space<vmem>>, vector<1x1x128xf32>,
    %cst_11 = arith.constant 0.000000e+00 : f32
    %11 = vector.broadcast %cst_11 : f32 to vector<1x1x128xf32>
    %c0_12 = arith.constant 0 : index
    %c17 = arith.constant 17 : index
    %c0_13 = arith.constant 0 : index
    %12 = vector.load %arg11[%c0_12, %c17, %c0_13] : memref<1x18x128xf32, #tpu.memory_space<vmem>>, vector<1x1x128xf32>
    tpu.vector_store %arg11[%c0_12, %c17, %c0_13], %11 {strides = array<i32>} : memref<1x18x128xf32, #tpu.memory_space<vmem>>, vector<1x1x128xf32>,
    %13 = vector.shape_cast %8 : vector<16x128xf32> to vector<1x16x128xf32>
    %c0_14 = arith.constant 0 : index
    %c1 = arith.constant 1 : index
    %c0_15 = arith.constant 0 : index
    %14 = vector.load %arg11[%c0_14, %c1, %c0_15] : memref<1x18x128xf32, #tpu.memory_space<vmem>>, vector<1x16x128xf32>
    tpu.vector_store %arg11[%c0_14, %c1, %c0_15], %13 {strides = array<i32>} : memref<1x18x128xf32, #tpu.memory_space<vmem>>, vector<1x16x128xf32>,
    %c0_16 = arith.constant 0 : index
    %c0_17 = arith.constant 0 : index
    %c0_18 = arith.constant 0 : index
    %15 = tpu.strided_load %arg11[%c0_16, %c0_17, %c0_18] {strides = array<i32: 1, 2, 1>} : memref<1x18x128xf32, #tpu.memory_space<vmem>>, vector<1x8x128xf32>
    %16 = vector.shape_cast %15 : vector<1x8x128xf32> to vector<8x128xf32>
    %c0_19 = arith.constant 0 : index
    %c0_20 = arith.constant 0 : index
    %c0_21 = arith.constant 0 : index
    %17 = vector.load %arg4[%c0_19, %c0_20, %c0_21] : memref<3x128x128xf32, #tpu.memory_space<vmem>>, vector<1x128x128xf32>
    %18 = vector.shape_cast %17 : vector<1x128x128xf32> to vector<128x128xf32>
    %cst_22 = arith.constant dense<0.000000e+00> : vector<8x128xf32>
    %19 = tpu.matmul %16, %18, %cst_22 {dimension_numbers = #tpu.dot_dimension_numbers<[1], [0], [0], [1], [0, 0, 1, 1], [], []>} : vector<8x128xf32>, vector<128x128xf32>, vector<8x128xf32> -> vector<8x128xf32>
    %c0_23 = arith.constant 0 : index
    %c1_24 = arith.constant 1 : index
    %c0_25 = arith.constant 0 : index
    %20 = tpu.strided_load %arg11[%c0_23, %c1_24, %c0_25] {strides = array<i32: 1, 2, 1>} : memref<1x18x128xf32, #tpu.memory_space<vmem>>, vector<1x8x128xf32>
    %21 = vector.shape_cast %20 : vector<1x8x128xf32> to vector<8x128xf32>
    %c1_26 = arith.constant 1 : index
    %c0_27 = arith.constant 0 : index
    %c0_28 = arith.constant 0 : index
    %22 = vector.load %arg4[%c1_26, %c0_27, %c0_28] : memref<3x128x128xf32, #tpu.memory_space<vmem>>, vector<1x128x128xf32>
    %23 = vector.shape_cast %22 : vector<1x128x128xf32> to vector<128x128xf32>
    %cst_29 = arith.constant dense<0.000000e+00> : vector<8x128xf32>
    %24 = tpu.matmul %21, %23, %cst_29 {dimension_numbers = #tpu.dot_dimension_numbers<[1], [0], [0], [1], [0, 0, 1, 1], [], []>} : vector<8x128xf32>, vector<128x128xf32>, vector<8x128xf32> -> vector<8x128xf32>
    %25 = arith.addf %19, %24 : vector<8x128xf32>
    %c0_30 = arith.constant 0 : index
    %c2 = arith.constant 2 : index
    %c0_31 = arith.constant 0 : index
    %26 = tpu.strided_load %arg11[%c0_30, %c2, %c0_31] {strides = array<i32: 1, 2, 1>} : memref<1x18x128xf32, #tpu.memory_space<vmem>>, vector<1x8x128xf32>
    %27 = vector.shape_cast %26 : vector<1x8x128xf32> to vector<8x128xf32>
    %c2_32 = arith.constant 2 : index
    %c0_33 = arith.constant 0 : index
    %c0_34 = arith.constant 0 : index
    %28 = vector.load %arg4[%c2_32, %c0_33, %c0_34] : memref<3x128x128xf32, #tpu.memory_space<vmem>>, vector<1x128x128xf32>
    %29 = vector.shape_cast %28 : vector<1x128x128xf32> to vector<128x128xf32>
    %cst_35 = arith.constant dense<0.000000e+00> : vector<8x128xf32>
    %30 = tpu.matmul %27, %29, %cst_35 {dimension_numbers = #tpu.dot_dimension_numbers<[1], [0], [0], [1], [0, 0, 1, 1], [], []>} : vector<8x128xf32>, vector<128x128xf32>, vector<8x128xf32> -> vector<8x128xf32>
    %31 = arith.addf %25, %30 : vector<8x128xf32>
    %c0_36 = arith.constant 0 : index
    %c0_37 = arith.constant 0 : index
    %32 = vector.load %arg5[%c0_36, %c0_37] : memref<1x128xf32, #tpu.memory_space<vmem>>, vector<1x128xf32>
    %33 = vector.broadcast %32 : vector<1x128xf32> to vector<8x128xf32>
    %34 = arith.addf %31, %33 : vector<8x128xf32>
    %cst_38 = arith.constant 0.000000e+00 : f32
    %35 = vector.broadcast %cst_38 : f32 to vector<8x128xf32>
    %36 = arith.maximumf %34, %35 : vector<8x128xf32>
    %c0_39 = arith.constant 0 : index
    %c0_40 = arith.constant 0 : index
    %37 = vector.load %arg6[%c0_39, %c0_40] : memref<128x128xf32, #tpu.memory_space<vmem>>, vector<128x128xf32>
    %cst_41 = arith.constant dense<0.000000e+00> : vector<8x128xf32>
    %38 = tpu.matmul %36, %37, %cst_41 {dimension_numbers = #tpu.dot_dimension_numbers<[1], [0], [0], [1], [0, 0, 1, 1], [], []>} : vector<8x128xf32>, vector<128x128xf32>, vector<8x128xf32> -> vector<8x128xf32>
    %c0_42 = arith.constant 0 : index
    %c0_43 = arith.constant 0 : index
    %39 = vector.load %arg7[%c0_42, %c0_43] : memref<1x128xf32, #tpu.memory_space<vmem>>, vector<1x128xf32>
    %40 = vector.broadcast %39 : vector<1x128xf32> to vector<8x128xf32>
    %41 = arith.addf %38, %40 : vector<8x128xf32>
    %c0_44 = arith.constant 0 : index
    %c0_45 = arith.constant 0 : index
    %c0_46 = arith.constant 0 : index
    %42 = tpu.strided_load %arg1[%c0_44, %c0_45, %c0_46] {strides = array<i32: 1, 2, 1>} : memref<1x16x4xf32, #tpu.memory_space<vmem>>, vector<1x8x4xf32>
    %43 = vector.shape_cast %42 : vector<1x8x4xf32> to vector<8x4xf32>
    %c0_47 = arith.constant 0 : index
    %c0_48 = arith.constant 0 : index
    %44 = vector.load %arg8[%c0_47, %c0_48] : memref<4x128xf32, #tpu.memory_space<vmem>>, vector<4x128xf32>
    %cst_49 = arith.constant dense<0.000000e+00> : vector<8x128xf32>
    %45 = tpu.matmul %43, %44, %cst_49 {dimension_numbers = #tpu.dot_dimension_numbers<[1], [0], [0], [1], [0, 0, 1, 1], [], []>} : vector<8x4xf32>, vector<4x128xf32>, vector<8x128xf32> -> vector<8x128xf32>
    %c0_50 = arith.constant 0 : index
    %c0_51 = arith.constant 0 : index
    %46 = vector.load %arg9[%c0_50, %c0_51] : memref<1x128xf32, #tpu.memory_space<vmem>>, vector<1x128xf32>
    %47 = vector.broadcast %46 : vector<1x128xf32> to vector<8x128xf32>
    %48 = arith.addf %45, %47 : vector<8x128xf32>
    %49 = arith.addf %41, %48 : vector<8x128xf32>
    %cst_52 = arith.constant 0.000000e+00 : f32
    %50 = vector.broadcast %cst_52 : f32 to vector<8x128xf32>
    %51 = arith.maximumf %49, %50 : vector<8x128xf32>
    %52 = vector.shape_cast %51 : vector<8x128xf32> to vector<1x8x128xf32>
    %c0_53 = arith.constant 0 : index
    %c0_54 = arith.constant 0 : index
    %c0_55 = arith.constant 0 : index
    %53 = vector.load %arg10[%c0_53, %c0_54, %c0_55] : memref<1x8x128xf32, #tpu.memory_space<vmem>>, vector<1x8x128xf32>
    tpu.vector_store %arg10[%c0_53, %c0_54, %c0_55], %52 {strides = array<i32>} : memref<1x8x128xf32, #tpu.memory_space<vmem>>, vector<1x8x128xf32>,
    return
  }
  func.func @transform_0(%arg0: i32) -> (i32, i32, i32) {
    %c0_i32 = arith.constant 0 : i32
    %c0_i32_0 = arith.constant 0 : i32
    %c0_i32_1 = arith.constant 0 : i32
    return %arg0, %c0_i32, %c0_i32_0 : i32, i32, i32
  }
  func.func @transform_1(%arg0: i32) -> (i32, i32) {
    %c0_i32 = arith.constant 0 : i32
    %c0_i32_0 = arith.constant 0 : i32
    %c0_i32_1 = arith.constant 0 : i32
    return %c0_i32, %c0_i32_0 : i32, i32
  }
  func.func @transform_2(%arg0: i32) -> (i32, i32) {
    %c0_i32 = arith.constant 0 : i32
    %c0_i32_0 = arith.constant 0 : i32
    %c0_i32_1 = arith.constant 0 : i32
    return %c0_i32, %c0_i32_0 : i32, i32
  }
  func.func @transform_3(%arg0: i32) -> (i32, i32, i32) {
    %c0_i32 = arith.constant 0 : i32
    %c0_i32_0 = arith.constant 0 : i32
    %c0_i32_1 = arith.constant 0 : i32
    %c0_i32_2 = arith.constant 0 : i32
    return %c0_i32, %c0_i32_0, %c0_i32_1 : i32, i32, i32
  }
  func.func @transform_4(%arg0: i32) -> (i32, i32) {
    %c0_i32 = arith.constant 0 : i32
    %c0_i32_0 = arith.constant 0 : i32
    %c0_i32_1 = arith.constant 0 : i32
    return %c0_i32, %c0_i32_0 : i32, i32
  }
  func.func @transform_5(%arg0: i32) -> (i32, i32) {
    %c0_i32 = arith.constant 0 : i32
    %c0_i32_0 = arith.constant 0 : i32
    %c0_i32_1 = arith.constant 0 : i32
    return %c0_i32, %c0_i32_0 : i32, i32
  }
  func.func @transform_6(%arg0: i32) -> (i32, i32) {
    %c0_i32 = arith.constant 0 : i32
    %c0_i32_0 = arith.constant 0 : i32
    %c0_i32_1 = arith.constant 0 : i32
    return %c0_i32, %c0_i32_0 : i32, i32
  }
  func.func @transform_7(%arg0: i32) -> (i32, i32) {
    %c0_i32 = arith.constant 0 : i32
    %c0_i32_0 = arith.constant 0 : i32
    %c0_i32_1 = arith.constant 0 : i32
    return %c0_i32, %c0_i32_0 : i32, i32
  }
  func.func @transform_8(%arg0: i32) -> (i32, i32) {
    %c0_i32 = arith.constant 0 : i32
    %c0_i32_0 = arith.constant 0 : i32
    %c0_i32_1 = arith.constant 0 : i32
    return %c0_i32, %c0_i32_0 : i32, i32
  }
  func.func @transform_9(%arg0: i32) -> (i32, i32, i32) {
    %c0_i32 = arith.constant 0 : i32
    %c0_i32_0 = arith.constant 0 : i32
    %c0_i32_1 = arith.constant 0 : i32
    return %arg0, %c0_i32, %c0_i32_0 : i32, i32, i32
  }
}

</mosaic_0001>

<bundles_post_ra>
// kernel: tpu_custom_call.1
= control target key start
LH: loop header
LB: loop body
LE: loop exit
PB: predicated region body
PF: predicated region fallthrough
CT: control target
= control target key end

     0   :  { %14 = vsyncpa [#allocation4], 0  ;;  %s1738_s0 = inlined_call_operand.vmem [shape: f32[2,16,4], index: 0, kind: input, shape index: {}]   ;;  %s1739_s1 = inlined_call_operand.vmem [shape: f32[4,128], index: 1, kind: input, shape index: {}]   ;;  %s1740_s2 = inlined_call_operand.vmem [shape: f32[1,128], index: 2, kind: input, shape index: {}]   ;;  %s1741_s3 = inlined_call_operand.hbm [shape: f32[3,128,128], index: 3, kind: input, shape index: {}]   ;;  %s1742_s4 = inlined_call_operand.vmem [shape: f32[1,128], index: 4, kind: input, shape index: {}]   ;;  %s1743_s5 = inlined_call_operand.hbm [shape: f32[128,128], index: 5, kind: input, shape index: {}]   ;;  %s1744_s6 = inlined_call_operand.vmem [shape: f32[1,128], index: 6, kind: input, shape index: {}]   ;;  %s1745_s7 = inlined_call_operand.vmem [shape: f32[4,128], index: 7, kind: input, shape index: {}]   ;;  %s1746_s8 = inlined_call_operand.vmem [shape: f32[1,128], index: 8, kind: input, shape index: {}]   ;;  %s1747_s9 = inlined_call_operand.hbm [shape: f32[2,8,128], index: 9, kind: output, shape index: {}]  }
   0x1   :  { %15 = vsyncpa [#allocation7], 0 }
   0x2   :  { %16 = vsyncpa [#allocation5], 0 }
   0x3   :  { %18 = vsyncpa [#allocation5 + $0x1], 0  ;;  %s1505_s30 = smov 0   ;;  %s1507_s10 = smov 0  }
   0x4   :  { %s1509_s11 = smov 0   ;;  %s1511_s12 = smov 0  }
   0x5 LB: > { %s1526_s13 = sadd.s32 4294967295, %s1446_s12   ;;  %s1014_s14 = sadd.s32 4294967294, %s1446_s12   ;;  %s1446_s12 = sphi %s1511_s12, %s1761_s12   ;;  %s1442_s11 = sphi %s1509_s11, %s1760_s11   ;;  %s1438_s10 = sphi %s1507_s10, %s1759_s10   ;;  %s1434_s30 = sphi %s1505_s30, %s1758_s30  }
   0x6   : > { %s1530_s15 = sadd.s32 1, %s1446_s12   ;;  %s225_s16 = sadd.s32 1, %s1442_s11 }
   0x7   : > { %s222_s17 = ssub.s32 %s1446_s12, %s1530_s15  ;;  %p235_p0 = scmp.ne.s32.totalorder %s1442_s11, %s1438_s10 }
   0x8   : > { %p223_p1 = scmp.eq.s32.totalorder %s222_s17, 0  ;;  %p236_p2 = scmp.eq.s32.totalorder %s1526_s13, 1 }
   0x9   : > { %p241_p3 = scmp.ne.s32.totalorder %s1438_s10, %s1434_s30  ;;  %p242_p4 = scmp.eq.s32.totalorder %s1014_s14, 1 }
   0xa   : > { %s1541_s18 = scalar_select %p223_p1, %s1442_s11, %s225_s16  }
   0xb   : > { %p1543_p5 = por %p236_p2, %p235_p0  ;;  %p1547_p6 = por %p242_p4, %p241_p3 }
   0xc   : > { %p1015_p7 = scmp.ge.s32.totalorder %s1446_s12, 1  ;;  %p249_p8 = scmp.lt.s32.totalorder %s1446_s12, 3 }
   0xd   : > { %s1750_s20 = scalar_select %p1547_p6, 1, 0 }
   0xe   : > { %p1748_p9 = scmp.eq.s32.totalorder %s1526_s13, 0  ;;  %p1554_p10 = pnand %p1015_p7, %p249_p8 }
   0xf   : > { %s1448_s22 = smov [#allocation3]   ;;  %s1449_s25 = smov [#allocation6]  }
  0x10   : > { %s267_s23 = sshll.u32 %s1448_s22, 4  ;;  %p1272_p11 = pneg %p1554_p10  ;;  %s268_s23 = int_to_ptr.vmem [resolvable:$true] %s267_s23 }
  0x11   : > { %s283_s26 = sshll.u32 %s1449_s25, 4  ;;  %s1337_s27 = scalar_lea.vmem %s268_s23, 6144  ;;  %s284_s26 = int_to_ptr.vmem [resolvable:$true] %s283_s26 }
  0x12   : > { %p1562_p12 = pnand %p1748_p9, %p1272_p11  ;;  %p1338_p0 = scmp.ne.s32.totalorder %s268_s23, %s1337_s27 }
  0x13   : > { %p1345_p3 = scmp.lt.s32.totalorder %s268_s23, %s268_s23  ;;  %p1346_p4 = scmp.lt.s32.totalorder %s1337_s27, %s1337_s27 }
  0x14   : > { %p1328_p13 = pneg %p1562_p12 }
  0x15   : > { %p1347_p7 = por %p1346_p4, %p1345_p3 }
  0x16   : > { %p1340_p1 = pnand %p1338_p0, %p1328_p13 }
  0x18   : > { %p1341_p2 = pneg %p1340_p1 }
  0x1a   : > { %p1348_p8 = pnand %p1347_p7, %p1341_p2 }
  0x1c   : > { %1351 = shalt.err (!%p1348_p8)
}
  0x1d   : > { %s1450_s28 = smov 128   ;;  %s1451_s29 = smov 8  }
  0x1e   : > { %1275 = dma.hbm_to_vmem [thread:$0]  (!%p1562_p12), %s1741_s3, 6144, %s268_s23, [#allocation4], %s1450_s28, %s1450_s28, %s1451_s29  }
  0x1f   : > { %s1363_s17 = scalar_lea.vmem %s284_s26, 2048  ;;  %p1371_p9 = scmp.lt.s32.totalorder %s284_s26, %s284_s26 }
  0x20   : > { %p1364_p11 = scmp.ne.s32.totalorder %s284_s26, %s1363_s17  ;;  %p1372_p6 = scmp.lt.s32.totalorder %s1363_s17, %s1363_s17 }
  0x22   : > { %p1366_p0 = pnand %p1364_p11, %p1328_p13  ;;  %p1373_p3 = por %p1372_p6, %p1371_p9 }
  0x24   : > { %p1367_p1 = pneg %p1366_p0 }
  0x26   : > { %p1374_p2 = pnand %p1373_p3, %p1367_p1 }
  0x28   : > { %1377 = shalt.err (!%p1374_p2)
}
  0x29   : > { %1278 = dma.hbm_to_vmem [thread:$0]  (!%p1562_p12), %s1743_s5, 2048, %s284_s26, [#allocation7], %s1450_s28, %s1450_s28, %s1451_s29  }
  0x2a   : > { %316 = sbr.rel (%p1554_p10) target bundleno = 709 (0x2c5), region = 56  ;;  %p1753_p4 = scmp.eq.s32.totalorder (!%p1554_p10), %s1526_s13, 0 }
  0x2f   : > { %1421 = dma.done.wait (%p1753_p4), [#allocation4], 6144   ;;  %p1754_p13 = pmov %p1753_p4 }
  0x30   : > { %p1755_p7 = pmov %p1753_p4 }
  0x31   : > { %1423 = vsyncadd (%p1754_p13), [#allocation4], 4294961152 }
  0x32   : > { %1425 = dma.done.wait (%p1755_p7), [#allocation7], 2048   ;;  %p1756_p6 = pmov %p1753_p4 }
  0x33   : > { %p356_p9 = scmp.lt.s32.totalorder %s1526_s13, 1  ;;  %v1452_v0 = vmov 0.0   ;;  %vm378_vm0 = vcmask 1043456   ;;  %vm371_vm1 = vcmask 31744   ;;  %v363_v1 = vld [vmem:[%s1739_s1] sm:$0xf] }
  0x34   : > { %1427 = vsyncadd (%p1756_p6), [#allocation7], 4294965248  ;;  %459 = vst [vmem:[#allocation2] sm:$0x1] %v1452_v0  ;;  %1117 = vmatprep.subr.mxu1 %v1452_v0  ;;  %1112 = vmatprep.subr.msk.mxu0 %vm378_vm0, %v363_v1  ;;  %v498_v4 = vld [vmem:[#allocation3 + $0xf8] sm:$0xff]  ;;  %v497_v6 = vld [vmem:[#allocation3 + $0xf0] sm:$0xff] }
  0x35   : > { %s357_s21 = scalar_select %p356_p9, %s1526_s13, 1  ;;  %v479_v5 = vld [vmem:[#allocation3 + $0x78] sm:$0xff]  ;;  %1113 = vmatpush3.msk.msra.mxu0 %vm378_vm0, %v363_v1  ;;  %1118 = vmatpush3.msra.mxu1 %v498_v4  ;;  %v478_v7 = vld [vmem:[#allocation3 + $0x70] sm:$0xff]  ;;  %v496_v8 = vld [vmem:[#allocation3 + $0xe8] sm:$0xff]  ;;  %vm1453_vm2 = vmmov 0  }
  0x36   : > { %1152 = vmatprep.subr.mxu0 %v1452_v0  ;;  %1119 = vmatprep.subr.mxu1 %v1452_v0  ;;  %v477_v9 = vld [vmem:[#allocation3 + $0x68] sm:$0xff]  ;;  %v495_v10 = vld [vmem:[#allocation3 + $0xe0] sm:$0xff]  ;;  %v494_v12 = vld [vmem:[#allocation3 + $0xd8] sm:$0xff]  ;;  %s1035_s14 = sshll.u32 %s1526_s13, 7  ;;  %s1454_s28 = smov [#allocation8]  }
  0x37   : > { %s1038_s23 = sshll.u32 %s357_s21, 4  ;;  %1120 = vmatpush3.msra.mxu1 %v497_v6  ;;  %v476_v11 = vld [vmem:[#allocation3 + $0x60] sm:$0xff]  ;;  %v475_v13 = vld [vmem:[#allocation3 + $0x58] sm:$0xff]  ;;  %v493_v14 = vld [vmem:[#allocation3 + $0xd0] sm:$0xff]  ;;  %1149 = vmatprep.mubr.msk.f32.mxu1 %vm1453_vm2, %v1452_v0  ;;  %s931_s21 = scalar_lea.hbm %s1747_s9, %s1035_s14 }
  0x38   : > { %s1601_s27 = scalar_lea.vmem %s1738_s0, %s1038_s23  ;;  %1121 = vmatprep.subr.mxu1 %v1452_v0  ;;  %v474_v15 = vld [vmem:[#allocation3 + $0x50] sm:$0xff]  ;;  %v492_v16 = vld [vmem:[#allocation3 + $0xc8] sm:$0xff]  ;;  %v491_v18 = vld [vmem:[#allocation3 + $0xc0] sm:$0xff]  ;;  %s353_s23 = sand.u32 1, %s1438_s10  }
  0x39   : > { %v361_v2 = vld [vmem:[%s1601_s27] sm:$0xff]  ;;  %v362_v3 = vld [vmem:[%s1601_s27 + $0x8] sm:$0xff]  ;;  %1122 = vmatpush3.msra.mxu1 %v496_v8  ;;  %v472_v19 = vld [vmem:[#allocation3 + $0x40] sm:$0xff]  ;;  %s920_s24 = scalar_lea.sflag [#allocation5], %s353_s23  ;;  %s1382_s29 = sshll.u32 %s1454_s28, 4  ;;  %s1383_s29 = int_to_ptr.vmem [resolvable:$false] %s1382_s29 }
  0x3a   : > { %1114 = vmatprep.mubr.msk.f32.mxu0 %vm371_vm1, %v361_v2  ;;  %1123 = vmatprep.subr.mxu1 %v1452_v0  ;;  %v473_v17 = vld [vmem:[#allocation3 + $0x48] sm:$0xff]  ;;  %v490_v20 = vld [vmem:[#allocation3 + $0xb8] sm:$0xff]  ;;  %v489_v22 = vld [vmem:[#allocation3 + $0xb0] sm:$0xff]  ;;  %s1384_s13 = scalar_lea.vmem %s1383_s29, 256 }
  0x3b   : > { %1115 = vmatmul.mubr.msk.f32.vlgmr.msra.gmra.mxu0 %vm371_vm1, %v362_v3  ;;  %1124 = vmatpush3.msra.mxu1 %v495_v10  ;;  %v471_v21 = vld [vmem:[#allocation3 + $0x38] sm:$0xff]  ;;  %v470_v23 = vld [vmem:[#allocation3 + $0x30] sm:$0xff]  ;;  %v488_v24 = vld [vmem:[#allocation3 + $0xa8] sm:$0xff] }
  0x3c   : > { %1153 = vmatpush3.msra.mxu0 %v479_v5  ;;  %1125 = vmatprep.subr.mxu1 %v1452_v0  ;;  %v469_v25 = vld [vmem:[#allocation3 + $0x28] sm:$0xff]  ;;  %v487_v26 = vld [vmem:[#allocation3 + $0xa0] sm:$0xff]  ;;  %v486_v28 = vld [vmem:[#allocation3 + $0x98] sm:$0xff] }
  0x3d   : > { %1154 = vmatprep.subr.mxu0 %v1452_v0  ;;  %1126 = vmatpush3.msra.mxu1 %v494_v12  ;;  %v468_v27 = vld [vmem:[#allocation3 + $0x20] sm:$0xff]  ;;  %v467_v29 = vld [vmem:[#allocation3 + $0x18] sm:$0xff]  ;;  %v485_v30 = vld [vmem:[#allocation3 + $0x90] sm:$0xff] }
  0x3e   : > { %1155 = vmatpush3.msra.mxu0 %v478_v7  ;;  %1127 = vmatprep.subr.mxu1 %v1452_v0  ;;  %v466_v31 = vld [vmem:[#allocation3 + $0x10] sm:$0xff]  ;;  %v484_v32 = vld [vmem:[#allocation3 + $0x88] sm:$0xff]  ;;  %v483_v34 = vld [vmem:[#allocation3 + $0x80] sm:$0xff] }
  0x3f   : > { %1156 = vmatprep.subr.mxu0 %v1452_v0  ;;  %1128 = vmatpush3.msra.mxu1 %v493_v14  ;;  %v465_v33 = vld [vmem:[#allocation3 + $0x8] sm:$0xff]  ;;  %v464_v35 = vld [vmem:[#allocation3] sm:$0xff]  ;;  %v657_v43 = vld [vmem:[#allocation3 + $0x178] sm:$0xff] }
  0x40   : > { %1157 = vmatpush3.msra.mxu0 %v477_v9  ;;  %1129 = vmatprep.subr.mxu1 %v1452_v0  ;;  %v1025_v36 = vld [vmem:[%s1740_s2] ss:$0 sm:$0xff]  ;;  %v656_v46 = vld [vmem:[#allocation3 + $0x170] sm:$0xff]  ;;  %v654_v48 = vld [vmem:[#allocation3 + $0x160] sm:$0xff] }
  0x41   : > { %1158 = vmatprep.subr.mxu0 %v1452_v0  ;;  %1130 = vmatpush3.msra.mxu1 %v492_v16  ;;  %v655_v47 = vld [vmem:[#allocation3 + $0x168] sm:$0xff]  ;;  %v653_v49 = vld [vmem:[#allocation3 + $0x158] sm:$0xff]  ;;  %v652_v50 = vld [vmem:[#allocation3 + $0x150] sm:$0xff] }
  0x42   : > { %1159 = vmatpush3.msra.mxu0 %v476_v11  ;;  %1131 = vmatprep.subr.mxu1 %v1452_v0  ;;  %v651_v51 = vld [vmem:[#allocation3 + $0x148] sm:$0xff]  ;;  %v650_v52 = vld [vmem:[#allocation3 + $0x140] sm:$0xff]  ;;  %v649_v53 = vld [vmem:[#allocation3 + $0x138] sm:$0xff] }
  0x43   : > { %1160 = vmatprep.subr.mxu0 %v1452_v0  ;;  %1132 = vmatpush3.msra.mxu1 %v491_v18  ;;  %v648_v54 = vld [vmem:[#allocation3 + $0x130] sm:$0xff]  ;;  %v647_v55 = vld [vmem:[#allocation3 + $0x128] sm:$0xff]  ;;  %v646_v56 = vld [vmem:[#allocation3 + $0x120] sm:$0xff] }
  0x44   : > { %1161 = vmatpush3.msra.mxu0 %v475_v13  ;;  %1133 = vmatprep.subr.mxu1 %v1452_v0  ;;  %v645_v57 = vld [vmem:[#allocation3 + $0x118] sm:$0xff]  ;;  %v644_v58 = vld [vmem:[#allocation3 + $0x110] sm:$0xff]  ;;  %v643_v59 = vld [vmem:[#allocation3 + $0x108] sm:$0xff] }
  0x45   : > { %1162 = vmatprep.subr.mxu0 %v1452_v0  ;;  %1134 = vmatpush3.msra.mxu1 %v490_v20  ;;  %v642_v60 = vld [vmem:[#allocation3 + $0x100] sm:$0xff]  ;;  %v753_v62 = vld [vmem:[#allocation6 + $0x78] sm:$0xff]  ;;  %v752_v63 = vld [vmem:[#allocation6 + $0x70] sm:$0xff] }
  0x46   : > { %1163 = vmatpush3.msra.mxu0 %v474_v15  ;;  %1135 = vmatprep.subr.mxu1 %v1452_v0  ;;  %v751_v1 = vld [vmem:[#allocation6 + $0x68] sm:$0xff]  ;;  %v750_v2 = vld [vmem:[#allocation6 + $0x60] sm:$0xff]  ;;  %v749_v3 = vld [vmem:[#allocation6 + $0x58] sm:$0xff] }
  0x47   : > { %1164 = vmatprep.subr.mxu0 %v1452_v0  ;;  %1136 = vmatpush3.msra.mxu1 %v489_v22  ;;  %v748_v4 = vld [vmem:[#allocation6 + $0x50] sm:$0xff]  ;;  %v747_v5 = vld [vmem:[#allocation6 + $0x48] sm:$0xff]  ;;  %v746_v6 = vld [vmem:[#allocation6 + $0x40] sm:$0xff] }
  0x48   : > { %1165 = vmatpush3.msra.mxu0 %v473_v17  ;;  %1137 = vmatprep.subr.mxu1 %v1452_v0  ;;  %v745_v7 = vld [vmem:[#allocation6 + $0x38] sm:$0xff]  ;;  %v744_v8 = vld [vmem:[#allocation6 + $0x30] sm:$0xff]  ;;  %v743_v9 = vld [vmem:[#allocation6 + $0x28] sm:$0xff] }
  0x49   : > { %1166 = vmatprep.subr.mxu0 %v1452_v0  ;;  %1138 = vmatpush3.msra.mxu1 %v488_v24  ;;  %v742_v10 = vld [vmem:[#allocation6 + $0x20] sm:$0xff]  ;;  %v741_v11 = vld [vmem:[#allocation6 + $0x18] sm:$0xff]  ;;  %v740_v12 = vld [vmem:[#allocation6 + $0x10] sm:$0xff] }
  0x4a   : > { %1167 = vmatpush3.msra.mxu0 %v472_v19  ;;  %1139 = vmatprep.subr.mxu1 %v1452_v0  ;;  %v831_v13 = vld [vmem:[%s1601_s27] ss:$2 sm:$0xff]  ;;  %v738_v16 = vld [vmem:[#allocation6] sm:$0xff]  ;;  %s1022_s27 = sshll.u32 %s353_s23, 3 }
  0x4b   : > { %1168 = vmatprep.subr.mxu0 %v1452_v0  ;;  %1140 = vmatpush3.msra.mxu1 %v487_v26  ;;  %v832_v14 = vld [vmem:[%s1745_s7] sm:$0xf]  ;;  %s355_s16 = scalar_lea.vmem [#allocation8], %s1022_s27 }
  0x4c   : > { %1169 = vmatpush3.msra.mxu0 %v471_v21  ;;  %1141 = vmatprep.subr.mxu1 %v1452_v0  ;;  %v739_v15 = vld [vmem:[#allocation6 + $0x8] sm:$0xff]  ;;  %s933_s17 = sshll.u32 %s355_s16, 4  ;;  %s934_s17 = int_to_ptr.vmem [resolvable:$true] %s933_s17 }
  0x4d   : > { %1170 = vmatprep.subr.mxu0 %v1452_v0  ;;  %1142 = vmatpush3.msra.mxu1 %v486_v28  ;;  %s1378_s26 = scalar_lea.vmem %s934_s17, 128  ;;  %p1385_p11 = scmp.lt.s32.totalorder %s934_s17, %s1383_s29 }
  0x4e   : > { %1171 = vmatpush3.msra.mxu0 %v470_v23  ;;  %1143 = vmatprep.subr.mxu1 %v1452_v0  ;;  %v1029_v23 = vld [vmem:[%s1742_s4] ss:$0 sm:$0xff]  ;;  %p1379_p10 = scmp.ne.s32.totalorder %s934_s17, %s1378_s26  ;;  %p1386_p0 = scmp.lt.s32.totalorder %s1384_s13, %s1378_s26 }
  0x4f   : > { %1172 = vmatprep.subr.mxu0 %v1452_v0  ;;  %1144 = vmatpush3.msra.mxu1 %v485_v30  ;;  %v1030_v30 = vld [vmem:[%s1744_s6] ss:$0 sm:$0xff] }
  0x50   : > { %1173 = vmatpush3.msra.mxu0 %v469_v25  ;;  %1145 = vmatprep.subr.mxu1 %v1452_v0  ;;  %p1380_p12 = pnand %p1379_p10, %p1543_p5  ;;  %p1387_p1 = por %p1386_p0, %p1385_p11 }
  0x51   : > { %1174 = vmatprep.subr.mxu0 %v1452_v0  ;;  %1146 = vmatpush3.msra.mxu1 %v484_v32 }
  0x52   : > { %1175 = vmatpush3.msra.mxu0 %v468_v27  ;;  %1147 = vmatprep.subr.mxu1 %v1452_v0  ;;  %p1381_p8 = pneg %p1380_p12 }
  0x53   : > { %1176 = vmatprep.subr.mxu0 %v1452_v0  ;;  %1148 = vmatpush3.msra.mxu1 %v483_v34 }
  0x54   : > { %1177 = vmatpush3.msra.mxu0 %v467_v29  ;;  %1184 = vmatprep.mubr.msk.f32.mxu0 %vm1453_vm2, %v1452_v0  ;;  %v1031_v29 = vld [vmem:[%s1746_s8] ss:$0 sm:$0xff]  ;;  %p1388_p3 = pnand %p1387_p1, %p1381_p8 }
  0x55   : > { %1178 = vmatprep.subr.mxu0 %v1452_v0  ;;  %1187 = vmatprep.subr.mxu1 %v1452_v0 }
  0x56   : > { %1179 = vmatpush3.msra.mxu0 %v466_v31 }
  0x57   : > { %1180 = vmatprep.subr.mxu0 %v1452_v0 }
  0x58   : > { %1181 = vmatpush3.msra.mxu0 %v465_v33 }
  0x59   : > { %1182 = vmatprep.subr.mxu0 %v1452_v0 }
  0x5a   : > { %1183 = vmatpush3.msra.mxu0 %v464_v35 }
  0x5b   : > { %1222 = vmatprep.subr.mxu0 %v1452_v0 }
  0xfb   : > { %v1116_v37 = vpop.f32.mrf.mxu0 }
  0xfc   : > { %v454_v38 = vadd.f32 %v1116_v37, %v1025_v36 }
  0xfd   : > { %v448_v39 = vpop.f32.mrf.mxu0 }
  0xfe   : > { %v458_v40 = vmax.f32 %v454_v38, 0.0  ;;  %v449_v41 = vadd.f32 %v1025_v36, %v448_v39 }
 0x100   : > { %462 = vst [vmem:[#allocation2 + $0x9] sm:$0xff] %v458_v40  ;;  %v457_v42 = vmax.f32 %v449_v41, 0.0 }
 0x102   : > { %461 = vst [vmem:[#allocation2 + $0x1] sm:$0xff] %v457_v42 }
 0x109   : > { %v481_v44 = vld [vmem:[#allocation2 + $0x1] ss:$2 sm:$0xff]  ;;  %v463_v45 = vld [vmem:[#allocation2] ss:$2 sm:$0xff] }
 0x10a   : > { %1150 = vmatmul.mubr.f32.vlgmr.msra.gmra.mxu1 %v481_v44  ;;  %1185 = vmatmul.mubr.f32.vlgmr.msra.gmra.mxu0 %v463_v45  ;;  %v640_v61 = vld [vmem:[#allocation2 + $0x2] ss:$2 sm:$0xff] }
 0x10b   : > { %1188 = vmatpush3.msra.mxu1 %v657_v43  ;;  %1219 = vmatprep.mubr.msk.f32.mxu1 %vm1453_vm2, %v1452_v0 }
 0x10c   : > { %1189 = vmatprep.subr.mxu1 %v1452_v0  ;;  %1254 = vmatprep.mubr.msk.f32.mxu0 %vm1453_vm2, %v1452_v0 }
 0x10d   : > { %1190 = vmatpush3.msra.mxu1 %v656_v46  ;;  %1223 = vmatpush3.msra.mxu0 %v753_v62 }
 0x10e   : > { %1191 = vmatprep.subr.mxu1 %v1452_v0  ;;  %1224 = vmatprep.subr.mxu0 %v1452_v0 }
 0x10f   : > { %1192 = vmatpush3.msra.mxu1 %v655_v47  ;;  %1225 = vmatpush3.msra.mxu0 %v752_v63 }
 0x110   : > { %1193 = vmatprep.subr.mxu1 %v1452_v0  ;;  %1226 = vmatprep.subr.mxu0 %v1452_v0 }
 0x111   : > { %1194 = vmatpush3.msra.mxu1 %v654_v48  ;;  %1227 = vmatpush3.msra.mxu0 %v751_v1 }
 0x112   : > { %1195 = vmatprep.subr.mxu1 %v1452_v0  ;;  %1228 = vmatprep.subr.mxu0 %v1452_v0 }
 0x113   : > { %1196 = vmatpush3.msra.mxu1 %v653_v49  ;;  %1229 = vmatpush3.msra.mxu0 %v750_v2 }
 0x114   : > { %1197 = vmatprep.subr.mxu1 %v1452_v0  ;;  %1230 = vmatprep.subr.mxu0 %v1452_v0 }
 0x115   : > { %1198 = vmatpush3.msra.mxu1 %v652_v50  ;;  %1231 = vmatpush3.msra.mxu0 %v749_v3 }
 0x116   : > { %1199 = vmatprep.subr.mxu1 %v1452_v0  ;;  %1232 = vmatprep.subr.mxu0 %v1452_v0 }
 0x117   : > { %1200 = vmatpush3.msra.mxu1 %v651_v51  ;;  %1233 = vmatpush3.msra.mxu0 %v748_v4 }
 0x118   : > { %1201 = vmatprep.subr.mxu1 %v1452_v0  ;;  %1234 = vmatprep.subr.mxu0 %v1452_v0 }
 0x119   : > { %1202 = vmatpush3.msra.mxu1 %v650_v52  ;;  %1235 = vmatpush3.msra.mxu0 %v747_v5 }
 0x11a   : > { %1203 = vmatprep.subr.mxu1 %v1452_v0  ;;  %1236 = vmatprep.subr.mxu0 %v1452_v0 }
 0x11b   : > { %1204 = vmatpush3.msra.mxu1 %v649_v53  ;;  %1237 = vmatpush3.msra.mxu0 %v746_v6 }
 0x11c   : > { %1205 = vmatprep.subr.mxu1 %v1452_v0  ;;  %1238 = vmatprep.subr.mxu0 %v1452_v0 }
 0x11d   : > { %1206 = vmatpush3.msra.mxu1 %v648_v54  ;;  %1239 = vmatpush3.msra.mxu0 %v745_v7 }
 0x11e   : > { %1207 = vmatprep.subr.mxu1 %v1452_v0  ;;  %1240 = vmatprep.subr.mxu0 %v1452_v0 }
 0x11f   : > { %1208 = vmatpush3.msra.mxu1 %v647_v55  ;;  %1241 = vmatpush3.msra.mxu0 %v744_v8 }
 0x120   : > { %1209 = vmatprep.subr.mxu1 %v1452_v0  ;;  %1242 = vmatprep.subr.mxu0 %v1452_v0 }
 0x121   : > { %1210 = vmatpush3.msra.mxu1 %v646_v56  ;;  %1243 = vmatpush3.msra.mxu0 %v743_v9 }
 0x122   : > { %1211 = vmatprep.subr.mxu1 %v1452_v0  ;;  %1244 = vmatprep.subr.mxu0 %v1452_v0 }
 0x123   : > { %1212 = vmatpush3.msra.mxu1 %v645_v57  ;;  %1245 = vmatpush3.msra.mxu0 %v742_v10 }
 0x124   : > { %1213 = vmatprep.subr.mxu1 %v1452_v0  ;;  %1246 = vmatprep.subr.mxu0 %v1452_v0 }
 0x125   : > { %1214 = vmatpush3.msra.mxu1 %v644_v58  ;;  %1247 = vmatpush3.msra.mxu0 %v741_v11 }
 0x126   : > { %1215 = vmatprep.subr.mxu1 %v1452_v0  ;;  %1248 = vmatprep.subr.mxu0 %v1452_v0 }
 0x127   : > { %1216 = vmatpush3.msra.mxu1 %v643_v59  ;;  %1249 = vmatpush3.msra.mxu0 %v740_v12 }
 0x128   : > { %1217 = vmatprep.subr.mxu1 %v1452_v0  ;;  %1250 = vmatprep.subr.mxu0 %v1452_v0 }
 0x129   : > { %1218 = vmatpush3.msra.mxu1 %v642_v60  ;;  %1251 = vmatpush3.msra.mxu0 %v739_v15 }
 0x12a   : > { %1220 = vmatmul.mubr.f32.vlgmr.msra.gmra.mxu1 %v640_v61  ;;  %1257 = vmatprep.subr.mxu1 %v1452_v0 }
 0x12b   : > { %1259 = vmatprep.mubr.msk.f32.mxu1 %vm1453_vm2, %v1452_v0  ;;  %1258 = vmatpush3.msk.msra.mxu1 %vm378_vm0, %v832_v14 }
 0x12c   : > { %1252 = vmatprep.subr.mxu0 %v1452_v0 }
 0x12d   : > { %1253 = vmatpush3.msra.mxu0 %v738_v16 }
 0x12e   : > { %1260 = vmatmul.mubr.msk.f32.vlgmr.msra.gmra.mxu1 %vm371_vm1, %v831_v13 }
 0x1ca   : > { %v565_v17 = vpop.f32.mrf.mxu1  ;;  %v635_v18 = vpop.f32.mrf.mxu0 }
 0x1cb   : > { %v636_v21 = vadd.f32 %v635_v18, %v565_v17 }
 0x1cc   : > { %v1151_v19 = vpop.f32.mrf.mxu1  ;;  %v1186_v20 = vpop.f32.mrf.mxu0 }
 0x1ea   : > { %v724_v22 = vpop.f32.mrf.mxu1 }
 0x1eb   : > { %v728_v24 = vadd.f32 %v724_v22, %v636_v21 }
 0x1ec   : > { %v1221_v25 = vpop.f32.mrf.mxu1 }
 0x1ed   : > { %v736_v26 = vadd.f32 %v1029_v23, %v728_v24 }
 0x1ee   : > { %v912_v27 = vpop.f32.mrf.mxu1 }
 0x1ef   : > { %v737_v0 = vmax.f32 %v736_v26, 0.0  ;;  %v913_v31 = vadd.f32 %v1031_v29, %v912_v27 }
 0x1f0   : > { %v1261_v28 = vpop.f32.mrf.mxu1 }
 0x1f1   : > { %1255 = vmatmul.mubr.f32.vlgmr.msra.gmra.mxu0 %v737_v0 }
 0x2b1   : > { %v827_v32 = vpop.f32.mrf.mxu0 }
 0x2b2   : > { %v828_v33 = vadd.f32 %v1030_v30, %v827_v32 }
 0x2b3   : > { %v1256_v34 = vpop.f32.mrf.mxu0 }
 0x2b4   : > { %v916_v35 = vadd.f32 %v913_v31, %v828_v33 }
 0x2b6   : > { %v917_v36 = vmax.f32 %v916_v35, 0.0 }
 0x2b8   : > { %918 = vst [vmem:[%s355_s16] sm:$0xff] %v917_v36 }
 0x2b9   : > { %1391 = shalt.err (!%p1388_p3)
}
 0x2ba   : > { %s1392_s27 = scalar_lea.hbm %s931_s21, 128  ;;  %s1396_s16 = scalar_lea.hbm %s1747_s9, 256 }
 0x2bb   : > { %p1393_p2 = scmp.ne.s32.totalorder %s931_s21, %s1392_s27  ;;  %p1397_p7 = scmp.lt.s32.totalorder %s931_s21, %s1747_s9 }
 0x2bc   : > { %p1398_p6 = scmp.lt.s32.totalorder %s1396_s16, %s1392_s27 }
 0x2bd   : > { %p1394_p4 = pnand %p1393_p2, %p1543_p5 }
 0x2be   : > { %p1399_p9 = por %p1398_p6, %p1397_p7 }
 0x2bf   : > { %p1395_p13 = pneg %p1394_p4 }
 0x2c1   : > { %p1400_p10 = pnand %p1399_p9, %p1395_p13 }
 0x2c3   : > { %1403 = shalt.err (!%p1400_p10)
}
 0x2c4   : > { %1270 = dma.vmem_to_hbm [thread:$0]  (%p1543_p5), %s934_s17, 128, %s931_s21, %s920_s24  }
 0x2c5 PF: > { %p1287_p12 = scmp.ge.s32.totalorder %s1446_s12, 2  ;;  %s945_s26 = sand.u32 1, %s1434_s30  }
 0x2c6   : > { %p1757_p8 = scmp.ne.s32.totalorder %s1750_s20, 0  ;;  %s946_s28 = scalar_lea.sflag [#allocation5], %s945_s26 }
 0x2c8   : > { %p1280_p11 = pnand %p1287_p12, %p1757_p8 }
 0x2ca   : > { %p1281_p0 = pneg %p1280_p11 }
 0x2cc   : > { %1429 = dma.done.wait (%p1281_p0), %s946_s28, 128  }
 0x2cd   : > { %1431 = vsyncadd (%p1281_p0), %s946_s28, 4294967168  ;;  %p21_p1 = scmp.ge.s32.totalorder %s1530_s15, 4   ;;  %s1758_s30 = smov %s1438_s10 }
 0x2ce   : > { %s1759_s10 = smov %s1442_s11  ;;  %s1760_s11 = smov %s1541_s18 }
 0x2cf   : > { %s1761_s12 = smov %s1530_s15  ;;  %23 = sbr.rel (!%p21_p1) target bundleno = 5 (0x5), region = 104 }
 0x2d4   :  { %951 = vsyncpa [#allocation4], 1 }
 0x2d5   :  { %953 = vsyncpa [#allocation4 + $0x1], 1 }
 0x2d6   :  { %954 = vsyncpa [#allocation7], 1 }
 0x2d7   :  { %955 = vsyncpa [#allocation5], 1 }
 0x2d8   :  { %957 = vsyncpa [#allocation5 + $0x1], 1 }

</bundles_post_ra>
